<compile_context>
chip_gen: v7x
topology: tpu7x:2x2x1
jax: 0.10.0
libtpu: 0.0.40
codegen_flags: <defaults>
</compile_context>

<pallas_src>
import functools

import jax
import jax.numpy as jnp
from jax.experimental import pallas as pl
from jax.experimental.pallas import tpu as pltpu

LANE = 128  # TPU lane width; feature dims are padded to this.


def _gcn_fused_kernel(*refs, n_layers: int):
    """Fused multi-layer GraphConv.

    refs = (a, h0, w_0..w_{L-1}, b_0..b_{L-1}, out)
      a   : (N, N)    bf16   symmetrically-normalized adjacency
      h0  : (N, 128)  bf16   zero-padded input features
      w_i : (128,128) bf16   zero-padded layer weights
      b_i : (1, 128)  f32    zero-padded layer biases
      out : (N, 128)  f32    zero-padded logits (slice outside the kernel)
    """
    a_ref, h_ref = refs[0], refs[1]
    w_refs = refs[2:2 + n_layers]
    b_refs = refs[2 + n_layers:2 + 2 * n_layers]
    o_ref = refs[2 + 2 * n_layers]

    a = a_ref[...]          # (N, N) bf16, resident in VMEM for all layers
    h = h_ref[...]          # (N, 128) bf16

    for i in range(n_layers):            # unrolled: n_layers is static
        # H @ W : (N,128) x (128,128) -> (N,128), bf16 in / f32 accumulate (MXU)
        hw = jnp.dot(h, w_refs[i][...], preferred_element_type=jnp.float32)
        # A_hat @ (HW) : (N,N) x (N,128) -> (N,128), bf16 in / f32 accumulate (MXU)
        agg = jnp.dot(a, hw.astype(jnp.bfloat16),
                      preferred_element_type=jnp.float32)
        out = agg + b_refs[i][...]        # f32 bias broadcast over nodes (VPU)
        if i != n_layers - 1:
            h = jnp.maximum(out, 0.0).astype(jnp.bfloat16)   # ReLU, back to bf16
        else:
            o_ref[...] = out              # lane-dense (128-wide) f32 store


def _pad_to(x, shape):
    pads = [(0, t - s) for s, t in zip(x.shape, shape)]
    return jnp.pad(x, pads)


def gcn_forward(a_hat, features, weights, biases):
    """Full GCN forward, fully fused in a single Pallas kernel call.

    a_hat    : (N, N) f32 normalized adjacency
    features : (N, F_in) f32
    weights  : list of (F_in_i, F_out_i) f32
    biases   : list of (1, F_out_i) f32
    returns  : (N, n_classes) f32
    """
    n = features.shape[0]
    n_layers = len(weights)
    n_classes = weights[-1].shape[1]

    # bf16 MXU inputs, feature dims zero-padded to 128 lanes.
    a_bf = a_hat.astype(jnp.bfloat16)
    h0 = _pad_to(features, (n, LANE)).astype(jnp.bfloat16)
    w_pad = [_pad_to(w, (LANE, LANE)).astype(jnp.bfloat16) for w in weights]
    b_pad = [_pad_to(b, (1, LANE)).astype(jnp.float32) for b in biases]

    kernel = functools.partial(_gcn_fused_kernel, n_layers=n_layers)
    n_inputs = 2 + 2 * n_layers

    # TODO(synk): for large graphs (N in the thousands) switch to a per-layer
    # row-tiled kernel (precompute HW into VMEM, grid over (tm, N) row blocks
    # of A_hat marked 'parallel' for v7x megacore) and/or a block-sparse A_hat
    # walk via PrefetchScalarGridSpec; at N=64 everything fits in VMEM so a
    # single fused call is fastest.
    out_padded = pl.pallas_call(
        kernel,
        out_shape=jax.ShapeDtypeStruct((n, LANE), jnp.float32),
        in_specs=[pl.BlockSpec(memory_space=pltpu.MemorySpace.VMEM)] * n_inputs,
        out_specs=pl.BlockSpec(memory_space=pltpu.MemorySpace.VMEM),
    )(a_bf, h0, *w_pad, *b_pad)

    return out_padded[:, :n_classes]


def build_normalized_adjacency(key, n):
    """Random symmetric graph, DGL 'both' normalization: D^-1/2 A D^-1/2."""
    m = jax.random.bernoulli(key, p=0.15, shape=(n, n)).astype(jnp.float32)
    a = jnp.maximum(m, m.T)                        # symmetric
    a = a * (1.0 - jnp.eye(n, dtype=jnp.float32))  # no self loops (DGL default)
    deg = jnp.maximum(a.sum(axis=1), 1.0)
    d_inv_sqrt = 1.0 / jnp.sqrt(deg)
    return a * d_inv_sqrt[:, None] * d_inv_sqrt[None, :]


def _reference_bf16(a_hat, features, weights, biases):
    """Pure-JAX reference with the same bf16-in / f32-accumulate math."""
    a = a_hat.astype(jnp.bfloat16)
    h = features.astype(jnp.bfloat16)
    for i, (w, b) in enumerate(zip(weights, biases)):
        hw = jnp.dot(h, w.astype(jnp.bfloat16),
                     preferred_element_type=jnp.float32)
        out = jnp.dot(a, hw.astype(jnp.bfloat16),
                      preferred_element_type=jnp.float32) + b
        if i != len(weights) - 1:
            h = jnp.maximum(out, 0.0).astype(jnp.bfloat16)
        else:
            return out


def _reference_f32(a_hat, features, weights, biases):
    h = features
    for i, (w, b) in enumerate(zip(weights, biases)):
        h = a_hat @ (h @ w) + b
        if i != len(weights) - 1:
            h = jnp.maximum(h, 0.0)
    return h


if __name__ == "__main__":
    # Small shapes consistent with GCN(__init__): n_layers=2 -> 3 GraphConv layers.
    N = 64          # number of nodes
    IN_FEATS = 16
    N_HIDDEN = 32
    N_CLASSES = 8
    N_LAYERS = 2    # -> layer dims: 16->32, 32->32, 32->8

    key = jax.random.PRNGKey(0)
    k_graph, k_feat, *k_params = jax.random.split(key, 2 + 2 * (N_LAYERS + 1))

    a_hat = build_normalized_adjacency(k_graph, N)
    features = jax.random.normal(k_feat, (N, IN_FEATS), dtype=jnp.float32)

    dims = [IN_FEATS] + [N_HIDDEN] * N_LAYERS + [N_CLASSES]
    weights, biases = [], []
    for li in range(N_LAYERS + 1):
        fin, fout = dims[li], dims[li + 1]
        # Xavier-uniform-like deterministic init; zero bias (as in DGL GraphConv).
        limit = (6.0 / (fin + fout)) ** 0.5
        w = jax.random.uniform(
            k_params[li], (fin, fout), minval=-limit, maxval=limit,
            dtype=jnp.float32)
        b = jnp.zeros((1, fout), dtype=jnp.float32)
        weights.append(w)
        biases.append(b)

    # TODO(synk): training-mode dropout (p>0) not implemented; eval-mode
    # dropout is identity, which is what this forward reproduces.
    out = gcn_forward(a_hat, features, weights, biases)
    out = jax.block_until_ready(out)
    assert out.shape == (N, N_CLASSES)

    # Check against a pure-JAX reference using the same bf16/f32 math.
    ref_bf16 = _reference_bf16(a_hat, features, weights, biases)
    assert jnp.allclose(out, ref_bf16, atol=1e-2, rtol=1e-2), (
        float(jnp.max(jnp.abs(out - ref_bf16))))

    # Sanity check against the original full-f32 math (looser tolerance
    # because MXU inputs were cast to bf16).
    ref_f32 = _reference_f32(a_hat, features, weights, biases)
    assert jnp.allclose(out, ref_f32, atol=5e-2, rtol=5e-2), (
        float(jnp.max(jnp.abs(out - ref_f32))))

    print("KERNEL_OK")
</pallas_src>

<mosaic_0001>
module attributes {stable_mosaic.version = 11 : i64} {
  func.func @_gcn_fused_kernel(%arg0: memref<64x64xbf16, #tpu.memory_space<vmem>>, %arg1: memref<64x128xbf16, #tpu.memory_space<vmem>>, %arg2: memref<128x128xbf16, #tpu.memory_space<vmem>>, %arg3: memref<128x128xbf16, #tpu.memory_space<vmem>>, %arg4: memref<128x128xbf16, #tpu.memory_space<vmem>>, %arg5: memref<1x128xf32, #tpu.memory_space<vmem>>, %arg6: memref<1x128xf32, #tpu.memory_space<vmem>>, %arg7: memref<1x128xf32, #tpu.memory_space<vmem>>, %arg8: memref<64x128xf32, #tpu.memory_space<vmem>>) attributes {dimension_semantics = [], scalar_prefetch = 0 : i64, scratch_operands = 0 : i64, tpu.core_type = #tpu.core_type<tc>} {
    %c0 = arith.constant 0 : index
    %c0_0 = arith.constant 0 : index
    %0 = vector.load %arg0[%c0, %c0_0] : memref<64x64xbf16, #tpu.memory_space<vmem>>, vector<64x64xbf16>
    %c0_1 = arith.constant 0 : index
    %c0_2 = arith.constant 0 : index
    %1 = vector.load %arg1[%c0_1, %c0_2] : memref<64x128xbf16, #tpu.memory_space<vmem>>, vector<64x128xbf16>
    %c0_3 = arith.constant 0 : index
    %c0_4 = arith.constant 0 : index
    %2 = vector.load %arg2[%c0_3, %c0_4] : memref<128x128xbf16, #tpu.memory_space<vmem>>, vector<128x128xbf16>
    %cst = arith.constant dense<0.000000e+00> : vector<64x128xf32>
    %3 = tpu.matmul %1, %2, %cst {dimension_numbers = #tpu.dot_dimension_numbers<[1], [0], [0], [1], [0, 0, 1, 1], [], []>} : vector<64x128xbf16>, vector<128x128xbf16>, vector<64x128xf32> -> vector<64x128xf32>
    %4 = arith.truncf %3 : vector<64x128xf32> to vector<64x128xbf16>
    %cst_5 = arith.constant dense<0.000000e+00> : vector<64x128xf32>
    %5 = tpu.matmul %0, %4, %cst_5 {dimension_numbers = #tpu.dot_dimension_numbers<[1], [0], [0], [1], [0, 0, 1, 1], [], []>} : vector<64x64xbf16>, vector<64x128xbf16>, vector<64x128xf32> -> vector<64x128xf32>
    %c0_6 = arith.constant 0 : index
    %c0_7 = arith.constant 0 : index
    %6 = vector.load %arg5[%c0_6, %c0_7] : memref<1x128xf32, #tpu.memory_space<vmem>>, vector<1x128xf32>
    %7 = vector.broadcast %6 : vector<1x128xf32> to vector<64x128xf32>
    %8 = arith.addf %5, %7 : vector<64x128xf32>
    %cst_8 = arith.constant 0.000000e+00 : f32
    %9 = vector.broadcast %cst_8 : f32 to vector<64x128xf32>
    %10 = arith.maximumf %8, %9 : vector<64x128xf32>
    %11 = arith.truncf %10 : vector<64x128xf32> to vector<64x128xbf16>
    %c0_9 = arith.constant 0 : index
    %c0_10 = arith.constant 0 : index
    %12 = vector.load %arg3[%c0_9, %c0_10] : memref<128x128xbf16, #tpu.memory_space<vmem>>, vector<128x128xbf16>
    %cst_11 = arith.constant dense<0.000000e+00> : vector<64x128xf32>
    %13 = tpu.matmul %11, %12, %cst_11 {dimension_numbers = #tpu.dot_dimension_numbers<[1], [0], [0], [1], [0, 0, 1, 1], [], []>} : vector<64x128xbf16>, vector<128x128xbf16>, vector<64x128xf32> -> vector<64x128xf32>
    %14 = arith.truncf %13 : vector<64x128xf32> to vector<64x128xbf16>
    %cst_12 = arith.constant dense<0.000000e+00> : vector<64x128xf32>
    %15 = tpu.matmul %0, %14, %cst_12 {dimension_numbers = #tpu.dot_dimension_numbers<[1], [0], [0], [1], [0, 0, 1, 1], [], []>} : vector<64x64xbf16>, vector<64x128xbf16>, vector<64x128xf32> -> vector<64x128xf32>
    %c0_13 = arith.constant 0 : index
    %c0_14 = arith.constant 0 : index
    %16 = vector.load %arg6[%c0_13, %c0_14] : memref<1x128xf32, #tpu.memory_space<vmem>>, vector<1x128xf32>
    %17 = vector.broadcast %16 : vector<1x128xf32> to vector<64x128xf32>
    %18 = arith.addf %15, %17 : vector<64x128xf32>
    %cst_15 = arith.constant 0.000000e+00 : f32
    %19 = vector.broadcast %cst_15 : f32 to vector<64x128xf32>
    %20 = arith.maximumf %18, %19 : vector<64x128xf32>
    %21 = arith.truncf %20 : vector<64x128xf32> to vector<64x128xbf16>
    %c0_16 = arith.constant 0 : index
    %c0_17 = arith.constant 0 : index
    %22 = vector.load %arg4[%c0_16, %c0_17] : memref<128x128xbf16, #tpu.memory_space<vmem>>, vector<128x128xbf16>
    %cst_18 = arith.constant dense<0.000000e+00> : vector<64x128xf32>
    %23 = tpu.matmul %21, %22, %cst_18 {dimension_numbers = #tpu.dot_dimension_numbers<[1], [0], [0], [1], [0, 0, 1, 1], [], []>} : vector<64x128xbf16>, vector<128x128xbf16>, vector<64x128xf32> -> vector<64x128xf32>
    %24 = arith.truncf %23 : vector<64x128xf32> to vector<64x128xbf16>
    %cst_19 = arith.constant dense<0.000000e+00> : vector<64x128xf32>
    %25 = tpu.matmul %0, %24, %cst_19 {dimension_numbers = #tpu.dot_dimension_numbers<[1], [0], [0], [1], [0, 0, 1, 1], [], []>} : vector<64x64xbf16>, vector<64x128xbf16>, vector<64x128xf32> -> vector<64x128xf32>
    %c0_20 = arith.constant 0 : index
    %c0_21 = arith.constant 0 : index
    %26 = vector.load %arg7[%c0_20, %c0_21] : memref<1x128xf32, #tpu.memory_space<vmem>>, vector<1x128xf32>
    %27 = vector.broadcast %26 : vector<1x128xf32> to vector<64x128xf32>
    %28 = arith.addf %25, %27 : vector<64x128xf32>
    %c0_22 = arith.constant 0 : index
    %c0_23 = arith.constant 0 : index
    %29 = vector.load %arg8[%c0_22, %c0_23] : memref<64x128xf32, #tpu.memory_space<vmem>>, vector<64x128xf32>
    tpu.vector_store %arg8[%c0_22, %c0_23], %28 {strides = array<i32>} : memref<64x128xf32, #tpu.memory_space<vmem>>, vector<64x128xf32>,
    return
  }
}

</mosaic_0001>

<bundles_post_ra>
// kernel: tpu_custom_call.1
= control target key start
LH: loop header
LB: loop body
LE: loop exit
PB: predicated region body
PF: predicated region fallthrough
CT: control target
= control target key end

     0   :  { %13 = vsyncpa [#allocation3], 0  ;;  %s1444_s0 = inlined_call_operand.hbm [shape: bf16[64,64], index: 0, kind: input, shape index: {}]   ;;  %s1445_s1 = inlined_call_operand.hbm [shape: bf16[64,128], index: 1, kind: input, shape index: {}]   ;;  %s1446_s2 = inlined_call_operand.hbm [shape: bf16[128,128], index: 2, kind: input, shape index: {}]   ;;  %s1447_s3 = inlined_call_operand.hbm [shape: bf16[128,128], index: 3, kind: input, shape index: {}]   ;;  %s1448_s4 = inlined_call_operand.hbm [shape: bf16[128,128], index: 4, kind: input, shape index: {}]   ;;  %s1449_s5 = inlined_call_operand.vmem [shape: f32[1,128], index: 5, kind: input, shape index: {}]   ;;  %s1450_s6 = inlined_call_operand.vmem [shape: f32[1,128], index: 6, kind: input, shape index: {}]   ;;  %s1451_s7 = inlined_call_operand.vmem [shape: f32[1,128], index: 7, kind: input, shape index: {}]   ;;  %s1452_s8 = inlined_call_operand.hbm [shape: f32[64,128], index: 8, kind: output, shape index: {}]  }
   0x1   :  { %14 = vsyncpa [#allocation6], 0 }
   0x2   :  { %15 = vsyncpa [#allocation9], 0 }
   0x3   :  { %16 = vsyncpa [#allocation4], 0  ;;  %s1247_s27 = smov [#allocation5]   ;;  %s1248_s29 = smov [#allocation8]  }
   0x4   :  { %s34_s28 = sshll.u32 %s1247_s27, 4  ;;  %s58_s30 = sshll.u32 %s1248_s29, 4  ;;  %s35_s28 = int_to_ptr.vmem [resolvable:$true] %s34_s28  ;;  %s1302_s30 = int_to_ptr.vmem [resolvable:$true] %s58_s30 }
   0x5   :  { %s1107_s11 = scalar_lea.hbm %s1445_s1, 512 }
   0x6   :  { %p1108_p0 = scmp.ne.s32.totalorder %s1445_s1, %s1107_s11  ;;  %p1111_p1 = scmp.lt.u32.totalorder %s1107_s11, %s1445_s1 }
   0x8   :  { %p1113_p2 = pnand %p1111_p1, %p1108_p0 }
   0xa   :  { %1116 = shalt.err (!%p1113_p2)
}
   0xb   :  { %s1117_s16 = scalar_lea.vmem %s35_s28, 512  ;;  %p1122_p4 = scmp.lt.s32.totalorder %s35_s28, %s35_s28 }
   0xc   :  { %p1118_p3 = scmp.ne.s32.totalorder %s35_s28, %s1117_s16  ;;  %p1123_p5 = scmp.lt.s32.totalorder %s1117_s16, %s1117_s16 }
   0xe   :  { %p1124_p6 = por %p1123_p5, %p1122_p4 }
  0x10   :  { %p1125_p7 = pnand %p1124_p6, %p1118_p3 }
  0x12   :  { %1128 = shalt.err (!%p1125_p7)
}
  0x13   :  { %s1249_s17 = smov 64   ;;  %s1250_s18 = smov 4  }
  0x14   :  { %40 = dma.hbm_to_vmem [thread:$0]  %s1445_s1, 512, %s35_s28, [#allocation6], %s1249_s17, %s1249_s17, %s1250_s18  }
  0x15   :  { %s1129_s23 = scalar_lea.hbm %s1447_s3, 1024 }
  0x16   :  { %p1130_p8 = scmp.ne.s32.totalorder %s1447_s3, %s1129_s23  ;;  %p1133_p9 = scmp.lt.u32.totalorder %s1129_s23, %s1447_s3 }
  0x18   :  { %p1135_p10 = pnand %p1133_p9, %p1130_p8 }
  0x1a   :  { %1138 = shalt.err (!%p1135_p10)
}
  0x1b   :  { %s1139_s29 = scalar_lea.vmem %s1302_s30, 1024  ;;  %p1144_p12 = scmp.lt.s32.totalorder %s1302_s30, %s1302_s30 }
  0x1c   :  { %p1140_p11 = scmp.ne.s32.totalorder %s1302_s30, %s1139_s29  ;;  %p1145_p13 = scmp.lt.s32.totalorder %s1139_s29, %s1139_s29 }
  0x1e   :  { %p1146_p0 = por %p1145_p13, %p1144_p12 }
  0x20   :  { %p1147_p1 = pnand %p1146_p0, %p1140_p11 }
  0x22   :  { %1150 = shalt.err (!%p1147_p1)
}
  0x23   :  { %64 = dma.hbm_to_vmem [thread:$0]  %s1447_s3, 1024, %s1302_s30, [#allocation9], %s1249_s17, %s1249_s17, %s1250_s18  }
  0x24   :  { %s1251_s9 = smov [#allocation2]   ;;  %s1252_s11 = smov [#allocation7]  }
  0x25   :  { %s22_s10 = sshll.u32 %s1251_s9, 4  ;;  %s46_s12 = sshll.u32 %s1252_s11, 4  ;;  %s23_s10 = int_to_ptr.vmem [resolvable:$true] %s22_s10  ;;  %s1339_s12 = int_to_ptr.vmem [resolvable:$true] %s46_s12 }
  0x26   :  { %s1151_s15 = scalar_lea.hbm %s1444_s0, 512 }
  0x27   :  { %p1152_p2 = scmp.ne.s32.totalorder %s1444_s0, %s1151_s15  ;;  %p1155_p3 = scmp.lt.u32.totalorder %s1151_s15, %s1444_s0 }
  0x29   :  { %p1157_p4 = pnand %p1155_p3, %p1152_p2 }
  0x2b   :  { %1160 = shalt.err (!%p1157_p4)
}
  0x2c   :  { %s1161_s3 = scalar_lea.vmem %s23_s10, 512  ;;  %p1166_p6 = scmp.lt.s32.totalorder %s23_s10, %s23_s10 }
  0x2d   :  { %p1162_p5 = scmp.ne.s32.totalorder %s23_s10, %s1161_s3  ;;  %p1167_p7 = scmp.lt.s32.totalorder %s1161_s3, %s1161_s3 }
  0x2f   :  { %p1168_p8 = por %p1167_p7, %p1166_p6 }
  0x31   :  { %p1169_p9 = pnand %p1168_p8, %p1162_p5 }
  0x33   :  { %1172 = shalt.err (!%p1169_p9)
}
  0x34   :  { %28 = dma.hbm_to_vmem [thread:$0]  %s1444_s0, 512, %s23_s10, [#allocation3], %s1249_s17, %s1249_s17, %s1250_s18  }
  0x35   :  { %s1173_s25 = scalar_lea.hbm %s1446_s2, 1024 }
  0x36   :  { %p1174_p10 = scmp.ne.s32.totalorder %s1446_s2, %s1173_s25  ;;  %p1177_p11 = scmp.lt.u32.totalorder %s1173_s25, %s1446_s2 }
  0x38   :  { %p1179_p12 = pnand %p1177_p11, %p1174_p10 }
  0x3a   :  { %1182 = shalt.err (!%p1179_p12)
}
  0x3b   :  { %s1183_s28 = scalar_lea.vmem %s1339_s12, 1024  ;;  %p1188_p0 = scmp.lt.s32.totalorder %s1339_s12, %s1339_s12 }
  0x3c   :  { %p1184_p13 = scmp.ne.s32.totalorder %s1339_s12, %s1183_s28  ;;  %p1189_p1 = scmp.lt.s32.totalorder %s1183_s28, %s1183_s28 }
  0x3e   :  { %p1190_p2 = por %p1189_p1, %p1188_p0 }
  0x40   :  { %p1191_p3 = pnand %p1190_p2, %p1184_p13 }
  0x42   :  { %1194 = shalt.err (!%p1191_p3)
}
  0x43   :  { %52 = dma.hbm_to_vmem [thread:$0]  %s1446_s2, 1024, %s1339_s12, [#allocation6], %s1249_s17, %s1249_s17, %s1250_s18  }
  0x44   :  { %s1253_s10 = smov [#allocation10]   ;;  %s1195_s15 = scalar_lea.hbm %s1448_s4, 1024 }
  0x45   :  { %s70_s11 = sshll.u32 %s1253_s10, 4  ;;  %p1196_p4 = scmp.ne.s32.totalorder %s1448_s4, %s1195_s15  ;;  %s71_s11 = int_to_ptr.vmem [resolvable:$true] %s70_s11 }
  0x46   :  { %p1199_p5 = scmp.lt.u32.totalorder %s1195_s15, %s1448_s4 }
  0x48   :  { %p1201_p6 = pnand %p1199_p5, %p1196_p4 }
  0x4a   :  { %1204 = shalt.err (!%p1201_p6)
}
  0x4b   :  { %s1205_s3 = scalar_lea.vmem %s71_s11, 1024  ;;  %p1210_p8 = scmp.lt.s32.totalorder %s71_s11, %s71_s11 }
  0x4c   :  { %p1206_p7 = scmp.ne.s32.totalorder %s71_s11, %s1205_s3  ;;  %p1211_p9 = scmp.lt.s32.totalorder %s1205_s3, %s1205_s3 }
  0x4e   :  { %p1212_p10 = por %p1211_p9, %p1210_p8 }
  0x50   :  { %p1213_p11 = pnand %p1212_p10, %p1206_p7 }
  0x52   :  { %1216 = shalt.err (!%p1213_p11)
}
  0x53   :  { %76 = dma.hbm_to_vmem [thread:$0]  %s1448_s4, 1024, %s71_s11, [#allocation9], %s1249_s17, %s1249_s17, %s1250_s18  }
  0x54   :  { %1239 = dma.done.wait [#allocation3], 512  }
  0x55   :  { %1240 = vsyncadd [#allocation3], 4294966784 }
  0x56   :  { %1241 = dma.done.wait [#allocation6], 1536  }
  0x57   :  { %1242 = vsyncadd [#allocation6], 4294965760 }
  0x58   :  { %1243 = dma.done.wait [#allocation9], 2048  }
  0x59   :  { %1244 = vsyncadd [#allocation9], 4294965248  ;;  %v1075_v0 = vld [vmem:[#allocation7] sm:$0xff]   ;;  %v1076_v1 = vld [vmem:[#allocation7 + $0x8] sm:$0xff]   ;;  %vm299_vm0 = vcmask 523264   ;;  %s1254_s22 = smov [#allocation11]  }
  0x5a   :  { %945 = vmatprep.subr.bf16.mxu0 %v1075_v0  ;;  %v1077_v2 = vld [vmem:[#allocation7 + $0x10] sm:$0xff]   ;;  %v1078_v3 = vld [vmem:[#allocation7 + $0x18] sm:$0xff]   ;;  %v1083_v4 = vld [vmem:[#allocation5] sm:$0xff]   ;;  %s824_s23 = sshll.u32 %s1254_s22, 4  ;;  %s825_s23 = int_to_ptr.vmem [resolvable:$true] %s824_s23 }
  0x5b   :  { %946 = vmatpush3.bf16.msra.mxu0 %v1075_v0  ;;  %961 = vmatprep.mubr.bf16.mxu0 %v1083_v4  ;;  %v1079_v5 = vld [vmem:[#allocation7 + $0x20] sm:$0xff]   ;;  %v1080_v6 = vld [vmem:[#allocation7 + $0x28] sm:$0xff]   ;;  %v1081_v7 = vld [vmem:[#allocation7 + $0x30] sm:$0xff]   ;;  %p1222_p13 = scmp.lt.s32.totalorder %s825_s23, %s825_s23 }
  0x5c   :  { %947 = vmatprep.subr.bf16.mxu0 %v1076_v1  ;;  %v1082_v8 = vld [vmem:[#allocation7 + $0x38] sm:$0xff]   ;;  %v1084_v9 = vld [vmem:[#allocation5 + $0x8] sm:$0xff]   ;;  %v1085_v10 = vld [vmem:[#allocation5 + $0x10] sm:$0xff]  }
  0x5d   :  { %v1086_v11 = vld [vmem:[#allocation5 + $0x18] sm:$0xff]   ;;  %v1391_v12 = vld [vmem:[#allocation2] sm:$0xff]   ;;  %v1397_v26 = vld [vmem:[#allocation2 + $0x8] sm:$0xff]  }
  0x5e   :  { %977 = vmatprep.mubr.msk.bf16.mxu1 %vm299_vm0, %v1391_v12  ;;  %v1091_v25 = vld [vmem:[#allocation8] sm:$0xff]   ;;  %v1399_v27 = vld [vmem:[#allocation2 + $0x10] sm:$0xff]   ;;  %v1092_v28 = vld [vmem:[#allocation8 + $0x8] sm:$0xff]  }
  0x5f   :  { %948 = vmatpush3.bf16.msra.mxu0 %v1076_v1  ;;  %v1093_v29 = vld [vmem:[#allocation8 + $0x10] sm:$0xff]   ;;  %v1405_v30 = vld [vmem:[#allocation2 + $0x18] sm:$0xff]   ;;  %v1095_v32 = vld [vmem:[#allocation8 + $0x20] sm:$0xff]  }
  0x60   :  { %949 = vmatprep.subr.bf16.mxu0 %v1077_v2  ;;  %v1094_v31 = vld [vmem:[#allocation8 + $0x18] sm:$0xff]   ;;  %v1096_v33 = vld [vmem:[#allocation8 + $0x28] sm:$0xff]   ;;  %v1097_v34 = vld [vmem:[#allocation8 + $0x30] sm:$0xff]  }
  0x61   :  { %v1098_v35 = vld [vmem:[#allocation8 + $0x38] sm:$0xff]   ;;  %v850_v36 = vld [vmem:[%s1449_s5] ss:$0 sm:$0xff] }
  0x63   :  { %950 = vmatpush3.bf16.msra.mxu0 %v1077_v2 }
  0x64   :  { %951 = vmatprep.subr.bf16.mxu0 %v1078_v3 }
  0x67   :  { %952 = vmatpush3.bf16.msra.mxu0 %v1078_v3 }
  0x68   :  { %953 = vmatprep.subr.bf16.mxu0 %v1079_v5 }
  0x6b   :  { %954 = vmatpush3.bf16.msra.mxu0 %v1079_v5 }
  0x6c   :  { %955 = vmatprep.subr.bf16.mxu0 %v1080_v6 }
  0x6f   :  { %956 = vmatpush3.bf16.msra.mxu0 %v1080_v6 }
  0x70   :  { %957 = vmatprep.subr.bf16.mxu0 %v1081_v7 }
  0x73   :  { %958 = vmatpush3.bf16.msra.mxu0 %v1081_v7 }
  0x74   :  { %959 = vmatprep.subr.bf16.mxu0 %v1082_v8 }
  0x77   :  { %960 = vmatpush3.bf16.msra.mxu0 %v1082_v8 }
  0x7a   :  { %962 = vmatmul.mubr.bf16.vlgmr.msra.gmra.mrb[0].mxu0 %v1084_v9 }
  0x7b   :  { %965 = vmatprep.mubr.bf16.mxu0 %v1085_v10 }
  0x82   :  { %966 = vmatmul.mubr.bf16.gmra.mrb[4].mxu0 %v1086_v11 }
  0x83   :  { %1017 = vmatprep.mubr.msk.bf16.mxu0 %vm299_vm0, %v1391_v12 }
 0x14d   :  { %v963_v13 = vpop.f32.mrb[0].mxu0 }
 0x14e   :  { %v237_v14 = vpop.f32.mrb[1].mxu0 }
 0x14f   :  { %v964_v15 = vpop.f32.mrb[2].mxu0 }
 0x150   :  { %v269_v16 = vpack.c.bf16 %v964_v15, %v963_v13  ;;  %v240_v17 = vpop.f32.mrb[3].mxu0  ;;  %v1101_v15 = vld [vmem:[#allocation10 + $0x10] sm:$0xff]  }
 0x151   :  { %v268_v18 = vpack.c.bf16 %v240_v17, %v237_v14  ;;  %v1100_v14 = vld [vmem:[#allocation10 + $0x8] sm:$0xff]   ;;  %v1103_v17 = vld [vmem:[#allocation10 + $0x20] sm:$0xff]  }
 0x153   :  { %969 = vmatprep.subr.bf16.mxu1 %v268_v18 }
 0x154   :  { %970 = vmatpush3.bf16.msra.mxu1 %v268_v18  ;;  %v1104_v18 = vld [vmem:[#allocation10 + $0x28] sm:$0xff]  }
 0x155   :  { %v967_v19 = vpop.f32.mrb[4].mxu0  ;;  %971 = vmatprep.subr.bf16.mxu1 %v269_v16 }
 0x156   :  { %v253_v20 = vpop.f32.mrb[5].mxu0 }
 0x157   :  { %v968_v21 = vpop.f32.mrb[6].mxu0 }
 0x158   :  { %v271_v22 = vpack.c.bf16 %v968_v21, %v967_v19  ;;  %v256_v23 = vpop.f32.mrb[7].mxu0  ;;  %972 = vmatpush3.bf16.msra.mxu1 %v269_v16  ;;  %v1102_v16 = vld [vmem:[#allocation10 + $0x18] sm:$0xff]   ;;  %v1105_v19 = vld [vmem:[#allocation10 + $0x30] sm:$0xff]   ;;  %v867_v21 = vld [vmem:[%s1450_s6] ss:$0 sm:$0xff] }
 0x159   :  { %v270_v24 = vpack.c.bf16 %v256_v23, %v253_v20  ;;  %v1106_v20 = vld [vmem:[#allocation10 + $0x38] sm:$0xff]  }
 0x15b   :  { %973 = vmatprep.subr.bf16.mxu1 %v270_v24 }
 0x15c   :  { %974 = vmatpush3.bf16.msra.mxu1 %v270_v24 }
 0x15d   :  { %975 = vmatprep.subr.bf16.mxu1 %v271_v22 }
 0x160   :  { %976 = vmatpush3.bf16.msra.mxu1 %v271_v22 }
 0x161   :  { %985 = vmatprep.subr.bf16.mxu1 %v1091_v25 }
 0x163   :  { %978 = vmatmul.mubr.msk.bf16.vlgmr.msra.gmra.mrb[0].mxu1 %vm299_vm0, %v1397_v26 }
 0x164   :  { %981 = vmatprep.mubr.msk.bf16.mxu1 %vm299_vm0, %v1399_v27  ;;  %986 = vmatpush3.bf16.msra.mxu1 %v1091_v25 }
 0x165   :  { %987 = vmatprep.subr.bf16.mxu1 %v1092_v28 }
 0x168   :  { %988 = vmatpush3.bf16.msra.mxu1 %v1092_v28 }
 0x169   :  { %989 = vmatprep.subr.bf16.mxu1 %v1093_v29 }
 0x16b   :  { %982 = vmatmul.mubr.msk.bf16.gmra.mrb[4].mxu1 %vm299_vm0, %v1405_v30 }
 0x16c   :  { %990 = vmatpush3.bf16.msra.mxu1 %v1093_v29 }
 0x16d   :  { %991 = vmatprep.subr.bf16.mxu1 %v1094_v31 }
 0x170   :  { %992 = vmatpush3.bf16.msra.mxu1 %v1094_v31 }
 0x171   :  { %993 = vmatprep.subr.bf16.mxu1 %v1095_v32 }
 0x174   :  { %994 = vmatpush3.bf16.msra.mxu1 %v1095_v32 }
 0x175   :  { %995 = vmatprep.subr.bf16.mxu1 %v1096_v33 }
 0x178   :  { %996 = vmatpush3.bf16.msra.mxu1 %v1096_v33 }
 0x179   :  { %997 = vmatprep.subr.bf16.mxu1 %v1097_v34 }
 0x17c   :  { %998 = vmatpush3.bf16.msra.mxu1 %v1097_v34 }
 0x17d   :  { %999 = vmatprep.subr.bf16.mxu1 %v1098_v35 }
 0x180   :  { %1000 = vmatpush3.bf16.msra.mxu1 %v1098_v35 }
 0x236   :  { %v979_v37 = vpop.f32.mrb[0].mxu1 }
 0x237   :  { %v355_v38 = vadd.f32 %v979_v37, %v850_v36  ;;  %v346_v39 = vpop.f32.mrb[1].mxu1 }
 0x238   :  { %v347_v40 = vadd.f32 %v850_v36, %v346_v39  ;;  %v980_v41 = vpop.f32.mrb[2].mxu1 }
 0x239   :  { %v358_v42 = vadd.f32 %v980_v41, %v850_v36  ;;  %v349_v43 = vpop.f32.mrb[3].mxu1  ;;  %v379_v45 = vmax.f32 %v355_v38, 0.0 }
 0x23a   :  { %v350_v44 = vadd.f32 %v850_v36, %v349_v43  ;;  %v377_v47 = vmax.f32 %v347_v40, 0.0 }
 0x23b   :  { %v380_v46 = vmax.f32 %v358_v42, 0.0 }
 0x23c   :  { %v378_v48 = vmax.f32 %v350_v44, 0.0 }
 0x23d   :  { %v386_v49 = vpack.c.bf16 %v380_v46, %v379_v45 }
 0x23e   :  { %v385_v50 = vpack.c.bf16 %v378_v48, %v377_v47  ;;  %v983_v51 = vpop.f32.mrb[4].mxu1 }
 0x23f   :  { %v371_v52 = vadd.f32 %v983_v51, %v850_v36  ;;  %v362_v53 = vpop.f32.mrb[5].mxu1 }
 0x240   :  { %v363_v54 = vadd.f32 %v850_v36, %v362_v53  ;;  %v984_v55 = vpop.f32.mrb[6].mxu1  ;;  %1001 = vmatprep.mubr.bf16.mxu1 %v385_v50 }
 0x241   :  { %v374_v56 = vadd.f32 %v984_v55, %v850_v36  ;;  %v365_v57 = vpop.f32.mrb[7].mxu1  ;;  %1002 = vmatmul.mubr.bf16.vlgmr.msra.gmra.mrb[8].mxu1 %v386_v49  ;;  %v383_v59 = vmax.f32 %v371_v52, 0.0 }
 0x242   :  { %v366_v58 = vadd.f32 %v850_v36, %v365_v57  ;;  %v381_v61 = vmax.f32 %v363_v54, 0.0 }
 0x243   :  { %v384_v60 = vmax.f32 %v374_v56, 0.0 }
 0x244   :  { %v382_v62 = vmax.f32 %v366_v58, 0.0 }
 0x245   :  { %v388_v63 = vpack.c.bf16 %v384_v60, %v383_v59 }
 0x246   :  { %v387_v0 = vpack.c.bf16 %v382_v62, %v381_v61 }
 0x248   :  { %1005 = vmatprep.mubr.bf16.mxu1 %v387_v0 }
 0x249   :  { %1006 = vmatmul.mubr.bf16.gmra.mrb[12].mxu1 %v388_v63 }
 0x24a   :  { %1057 = vmatprep.mubr.msk.bf16.mxu1 %vm299_vm0, %v1391_v12  ;;  %v1099_v12 = vld [vmem:[#allocation10] sm:$0xff]  }
 0x314   :  { %v1003_v1 = vpop.f32.mrb[8].mxu1 }
 0x315   :  { %v487_v2 = vpop.f32.mrb[9].mxu1 }
 0x316   :  { %v1004_v3 = vpop.f32.mrb[10].mxu1 }
 0x317   :  { %v519_v4 = vpack.c.bf16 %v1004_v3, %v1003_v1  ;;  %v490_v5 = vpop.f32.mrb[11].mxu1  ;;  %v880_v1 = vld [vmem:[%s1451_s7] ss:$0 sm:$0xff]  ;;  %s1217_s7 = scalar_lea.vmem %s825_s23, 1024 }
 0x318   :  { %v518_v6 = vpack.c.bf16 %v490_v5, %v487_v2  ;;  %p1218_p12 = scmp.ne.s32.totalorder %s825_s23, %s1217_s7  ;;  %p1223_p0 = scmp.lt.s32.totalorder %s1217_s7, %s1217_s7 }
 0x31a   :  { %1009 = vmatprep.subr.bf16.mxu0 %v518_v6  ;;  %p1224_p1 = por %p1223_p0, %p1222_p13 }
 0x31b   :  { %1010 = vmatpush3.bf16.msra.mxu0 %v518_v6 }
 0x31c   :  { %v1007_v7 = vpop.f32.mrb[12].mxu1  ;;  %1011 = vmatprep.subr.bf16.mxu0 %v519_v4  ;;  %p1225_p2 = pnand %p1224_p1, %p1218_p12 }
 0x31d   :  { %v503_v8 = vpop.f32.mrb[13].mxu1 }
 0x31e   :  { %v1008_v9 = vpop.f32.mrb[14].mxu1 }
 0x31f   :  { %v521_v10 = vpack.c.bf16 %v1008_v9, %v1007_v7  ;;  %v506_v11 = vpop.f32.mrb[15].mxu1  ;;  %1012 = vmatpush3.bf16.msra.mxu0 %v519_v4 }
 0x320   :  { %v520_v13 = vpack.c.bf16 %v506_v11, %v503_v8 }
 0x322   :  { %1013 = vmatprep.subr.bf16.mxu0 %v520_v13 }
 0x323   :  { %1014 = vmatpush3.bf16.msra.mxu0 %v520_v13 }
 0x324   :  { %1015 = vmatprep.subr.bf16.mxu0 %v521_v10 }
 0x327   :  { %1016 = vmatpush3.bf16.msra.mxu0 %v521_v10 }
 0x328   :  { %1025 = vmatprep.subr.bf16.mxu0 %v1099_v12 }
 0x32a   :  { %1018 = vmatmul.mubr.msk.bf16.vlgmr.msra.gmra.mrb[8].mxu0 %vm299_vm0, %v1397_v26 }
 0x32b   :  { %1021 = vmatprep.mubr.msk.bf16.mxu0 %vm299_vm0, %v1399_v27  ;;  %1026 = vmatpush3.bf16.msra.mxu0 %v1099_v12 }
 0x32c   :  { %1027 = vmatprep.subr.bf16.mxu0 %v1100_v14 }
 0x32f   :  { %1028 = vmatpush3.bf16.msra.mxu0 %v1100_v14 }
 0x330   :  { %1029 = vmatprep.subr.bf16.mxu0 %v1101_v15 }
 0x332   :  { %1022 = vmatmul.mubr.msk.bf16.gmra.mrb[12].mxu0 %vm299_vm0, %v1405_v30 }
 0x333   :  { %1030 = vmatpush3.bf16.msra.mxu0 %v1101_v15 }
 0x334   :  { %1031 = vmatprep.subr.bf16.mxu0 %v1102_v16 }
 0x337   :  { %1032 = vmatpush3.bf16.msra.mxu0 %v1102_v16 }
 0x338   :  { %1033 = vmatprep.subr.bf16.mxu0 %v1103_v17 }
 0x33b   :  { %1034 = vmatpush3.bf16.msra.mxu0 %v1103_v17 }
 0x33c   :  { %1035 = vmatprep.subr.bf16.mxu0 %v1104_v18 }
 0x33f   :  { %1036 = vmatpush3.bf16.msra.mxu0 %v1104_v18 }
 0x340   :  { %1037 = vmatprep.subr.bf16.mxu0 %v1105_v19 }
 0x343   :  { %1038 = vmatpush3.bf16.msra.mxu0 %v1105_v19 }
 0x344   :  { %1039 = vmatprep.subr.bf16.mxu0 %v1106_v20 }
 0x347   :  { %1040 = vmatpush3.bf16.msra.mxu0 %v1106_v20 }
 0x3fd   :  { %v1019_v22 = vpop.f32.mrb[8].mxu0 }
 0x3fe   :  { %v572_v23 = vadd.f32 %v1019_v22, %v867_v21  ;;  %v563_v24 = vpop.f32.mrb[9].mxu0 }
 0x3ff   :  { %v564_v25 = vadd.f32 %v867_v21, %v563_v24  ;;  %v1020_v28 = vpop.f32.mrb[10].mxu0 }
 0x400   :  { %v575_v29 = vadd.f32 %v1020_v28, %v867_v21  ;;  %v566_v31 = vpop.f32.mrb[11].mxu0  ;;  %v596_v33 = vmax.f32 %v572_v23, 0.0 }
 0x401   :  { %v567_v32 = vadd.f32 %v867_v21, %v566_v31  ;;  %v594_v35 = vmax.f32 %v564_v25, 0.0 }
 0x402   :  { %v597_v34 = vmax.f32 %v575_v29, 0.0 }
 0x403   :  { %v595_v36 = vmax.f32 %v567_v32, 0.0 }
 0x404   :  { %v603_v37 = vpack.c.bf16 %v597_v34, %v596_v33 }
 0x405   :  { %v602_v38 = vpack.c.bf16 %v595_v36, %v594_v35  ;;  %v1023_v39 = vpop.f32.mrb[12].mxu0 }
 0x406   :  { %v588_v40 = vadd.f32 %v1023_v39, %v867_v21  ;;  %v579_v41 = vpop.f32.mrb[13].mxu0 }
 0x407   :  { %v580_v42 = vadd.f32 %v867_v21, %v579_v41  ;;  %v1024_v43 = vpop.f32.mrb[14].mxu0  ;;  %1041 = vmatprep.mubr.bf16.mxu0 %v602_v38 }
 0x408   :  { %v591_v44 = vadd.f32 %v1024_v43, %v867_v21  ;;  %v582_v45 = vpop.f32.mrb[15].mxu0  ;;  %1042 = vmatmul.mubr.bf16.vlgmr.msra.gmra.mrb[16].mxu0 %v603_v37  ;;  %v600_v47 = vmax.f32 %v588_v40, 0.0 }
 0x409   :  { %v583_v46 = vadd.f32 %v867_v21, %v582_v45  ;;  %v598_v49 = vmax.f32 %v580_v42, 0.0 }
 0x40a   :  { %v601_v48 = vmax.f32 %v591_v44, 0.0 }
 0x40b   :  { %v599_v50 = vmax.f32 %v583_v46, 0.0 }
 0x40c   :  { %v605_v51 = vpack.c.bf16 %v601_v48, %v600_v47 }
 0x40d   :  { %v604_v52 = vpack.c.bf16 %v599_v50, %v598_v49 }
 0x40f   :  { %1045 = vmatprep.mubr.bf16.mxu0 %v604_v52 }
 0x410   :  { %1046 = vmatmul.mubr.bf16.gmra.mrb[20].mxu0 %v605_v51 }
 0x4db   :  { %v1043_v53 = vpop.f32.mrb[16].mxu0 }
 0x4dc   :  { %v704_v54 = vpop.f32.mrb[17].mxu0 }
 0x4dd   :  { %v1044_v55 = vpop.f32.mrb[18].mxu0 }
 0x4de   :  { %v736_v56 = vpack.c.bf16 %v1044_v55, %v1043_v53  ;;  %v707_v57 = vpop.f32.mrb[19].mxu0 }
 0x4df   :  { %v735_v58 = vpack.c.bf16 %v707_v57, %v704_v54 }
 0x4e1   :  { %1049 = vmatprep.subr.bf16.mxu1 %v735_v58 }
 0x4e2   :  { %1050 = vmatpush3.bf16.msra.mxu1 %v735_v58 }
 0x4e3   :  { %v1047_v59 = vpop.f32.mrb[20].mxu0  ;;  %1051 = vmatprep.subr.bf16.mxu1 %v736_v56 }
 0x4e4   :  { %v720_v60 = vpop.f32.mrb[21].mxu0 }
 0x4e5   :  { %v1048_v61 = vpop.f32.mrb[22].mxu0 }
 0x4e6   :  { %v738_v62 = vpack.c.bf16 %v1048_v61, %v1047_v59  ;;  %v723_v63 = vpop.f32.mrb[23].mxu0  ;;  %1052 = vmatpush3.bf16.msra.mxu1 %v736_v56 }
 0x4e7   :  { %v737_v0 = vpack.c.bf16 %v723_v63, %v720_v60 }
 0x4e9   :  { %1053 = vmatprep.subr.bf16.mxu1 %v737_v0 }
 0x4ea   :  { %1054 = vmatpush3.bf16.msra.mxu1 %v737_v0 }
 0x4eb   :  { %1055 = vmatprep.subr.bf16.mxu1 %v738_v62 }
 0x4ee   :  { %1056 = vmatpush3.bf16.msra.mxu1 %v738_v62 }
 0x4f1   :  { %1058 = vmatmul.mubr.msk.bf16.vlgmr.msra.gmra.mrb[16].mxu1 %vm299_vm0, %v1397_v26 }
 0x4f2   :  { %1061 = vmatprep.mubr.msk.bf16.mxu1 %vm299_vm0, %v1399_v27 }
 0x4f9   :  { %1062 = vmatmul.mubr.msk.bf16.gmra.mrb[20].mxu1 %vm299_vm0, %v1405_v30 }
 0x5c4   :  { %v1059_v2 = vpop.f32.mrb[16].mxu1 }
 0x5c5   :  { %v789_v3 = vadd.f32 %v1059_v2, %v880_v1  ;;  %v780_v4 = vpop.f32.mrb[17].mxu1 }
 0x5c6   :  { %v781_v5 = vadd.f32 %v880_v1, %v780_v4  ;;  %v1060_v6 = vpop.f32.mrb[18].mxu1 }
 0x5c7   :  { %813 = vst [vmem:[#allocation11 + $0x10] sm:$0xff] %v789_v3  ;;  %v792_v7 = vadd.f32 %v1060_v6, %v880_v1  ;;  %v783_v8 = vpop.f32.mrb[19].mxu1 }
 0x5c8   :  { %811 = vst [vmem:[#allocation11] sm:$0xff] %v781_v5  ;;  %v784_v26 = vadd.f32 %v880_v1, %v783_v8 }
 0x5c9   :  { %814 = vst [vmem:[#allocation11 + $0x18] sm:$0xff] %v792_v7 }
 0x5ca   :  { %812 = vst [vmem:[#allocation11 + $0x8] sm:$0xff] %v784_v26 }
 0x5cc   :  { %v1063_v27 = vpop.f32.mrb[20].mxu1 }
 0x5cd   :  { %v805_v30 = vadd.f32 %v1063_v27, %v880_v1  ;;  %v796_v9 = vpop.f32.mrb[21].mxu1 }
 0x5ce   :  { %v797_v10 = vadd.f32 %v880_v1, %v796_v9  ;;  %v1064_v11 = vpop.f32.mrb[22].mxu1 }
 0x5cf   :  { %817 = vst [vmem:[#allocation11 + $0x30] sm:$0xff] %v805_v30  ;;  %v808_v13 = vadd.f32 %v1064_v11, %v880_v1  ;;  %v799_v12 = vpop.f32.mrb[23].mxu1 }
 0x5d0   :  { %815 = vst [vmem:[#allocation11 + $0x20] sm:$0xff] %v797_v10  ;;  %v800_v14 = vadd.f32 %v880_v1, %v799_v12 }
 0x5d1   :  { %818 = vst [vmem:[#allocation11 + $0x38] sm:$0xff] %v808_v13 }
 0x5d2   :  { %816 = vst [vmem:[#allocation11 + $0x28] sm:$0xff] %v800_v14 }
 0x5d3   :  { %1228 = shalt.err (!%p1225_p2)
}
 0x5d4   :  { %s1229_s26 = scalar_lea.hbm %s1452_s8, 1024 }
 0x5d5   :  { %p1230_p3 = scmp.ne.s32.totalorder %s1452_s8, %s1229_s26  ;;  %p1233_p4 = scmp.lt.u32.totalorder %s1229_s26, %s1452_s8 }
 0x5d7   :  { %p1235_p5 = pnand %p1233_p4, %p1230_p3 }
 0x5d9   :  { %1238 = shalt.err (!%p1235_p5)
}
 0x5da   :  { %s1255_s0 = smov 128   ;;  %s1256_s9 = smov 8  }
 0x5db   :  { %830 = dma.vmem_to_hbm [thread:$0]  %s825_s23, 1024, %s1452_s8, [#allocation4], %s1255_s0, %s1255_s0, %s1256_s9  }
 0x5dc   :  { %1245 = dma.done.wait [#allocation4], 1024  }
 0x5dd   :  { %1246 = vsyncadd [#allocation4], 4294966272 }
 0x5de   :  { %834 = vsyncpa [#allocation3], 1 }
 0x5df   :  { %835 = vsyncpa [#allocation6], 1 }
 0x5e0   :  { %836 = vsyncpa [#allocation9], 1 }
 0x5e1   :  { %837 = vsyncpa [#allocation4], 1 }

</bundles_post_ra>
